<compile_context>
chip_gen: v7x
topology: tpu7x:2x2x1
jax: 0.10.0
libtpu: 0.0.40
codegen_flags: <defaults>
</compile_context>

<pallas_src>
import functools

import jax
import jax.numpy as jnp
from jax.experimental import pallas as pl
from jax.experimental.pallas import tpu as pltpu


# ---------------------------------------------------------------------------
# Validation (mirrors BaseModel.__init__).
# ---------------------------------------------------------------------------

def _validate(x: jax.Array, input_dim: int) -> None:
    """Static (wrapper-level, untraced) checks mirroring BaseModel.__init__."""
    assert isinstance(input_dim, int) and input_dim > 0, (
        "Input dimension must be a positive integer"
    )
    assert x.ndim == 2 and x.shape[-1] == input_dim, (
        f"expected x of shape [batch, {input_dim}], got {x.shape}"
    )


def base_model_forward(x: jax.Array, input_dim: int) -> jax.Array:
    """Production path for the (abstract) identity: zero bytes moved."""
    _validate(x, input_dim)
    return x


# ---------------------------------------------------------------------------
# Template kernel for concrete subclasses (tiled, pipelined pass-through).
# ---------------------------------------------------------------------------

def _passthrough_kernel(x_ref, o_ref):
    # Subclasses replace this line with their real per-tile compute.
    o_ref[...] = x_ref[...]


def _cdiv(a: int, b: int) -> int:
    return -(-a // b)


_FALLBACK_VMEM_BYTES = 64 * 1024 * 1024  # conservative: v7x per-TC physical VMEM


def _vmem_budget_bytes() -> int:
    """Generation-aware VMEM budget for the pipelined buffers."""
    cap = _FALLBACK_VMEM_BYTES
    try:
        info = pltpu.get_tpu_info()
        cap_attr = getattr(info, "vmem_capacity_bytes", None)
        if cap_attr:
            cap = int(cap_attr)
    except Exception:
        pass
    # Use at most ~half the physical per-core VMEM for the pipeline, and never
    # rely on more than 96 MiB even on 128 MiB parts (v5e/v6e).
    return min(cap // 2, 96 * 1024 * 1024)


def _pick_layout(n_elems: int, itemsize: int, sub: int, budget: int):
    """Choose (lane_width, rows_per_tile, padded_rows, pad_elems).

    The flat array is viewed as a lane-dense (rows, lane) slab with lane a
    multiple of 128 and rows padded to a whole number of tiles.  Tiles target
    ~8 MiB per buffer (4 double-buffered buffers must fit the budget).
    """
    target_tile_bytes = min(budget // 4, 8 * 1024 * 1024)

    lane = 128
    for cand in (1024, 512, 256, 128):
        if n_elems >= cand * sub:
            lane = cand
            break

    rows = _cdiv(n_elems, lane)
    tb = max(sub, (target_tile_bytes // (lane * itemsize)) // sub * sub)
    tb = min(tb, _cdiv(rows, sub) * sub)
    rows_padded = _cdiv(rows, tb) * tb
    pad_elems = rows_padded * lane - n_elems
    return lane, tb, rows_padded, pad_elems


@functools.partial(jax.jit, donate_argnums=(0,))
def _passthrough_pipeline(x: jax.Array) -> jax.Array:
    """Tiled pass-through over a lane-dense slab.  NOTE: x is donated."""
    n = x.size
    itemsize = jnp.dtype(x.dtype).itemsize
    sub = {4: 8, 2: 16, 1: 32}.get(itemsize, 8)  # packed-sublane granularity
    budget = _vmem_budget_bytes()
    lane, tb, rows_padded, pad_elems = _pick_layout(n, itemsize, sub, budget)

    flat = x.reshape(-1)
    if pad_elems:
        flat = jnp.concatenate([flat, jnp.zeros((pad_elems,), dtype=x.dtype)])
    slab = flat.reshape(rows_padded, lane)

    tile_bytes = tb * lane * itemsize
    grid = (rows_padded // tb,)

    out = pl.pallas_call(
        _passthrough_kernel,
        out_shape=jax.ShapeDtypeStruct(slab.shape, slab.dtype),
        grid=grid,
        in_specs=[pl.BlockSpec((tb, lane), lambda i: (i, 0))],
        out_specs=pl.BlockSpec((tb, lane), lambda i: (i, 0)),
        # Output aliases the (donated / intermediate) input slab: no separate
        # HBM output allocation.
        input_output_aliases={0: 0},
        compiler_params=pltpu.CompilerParams(
            dimension_semantics=("parallel",),
            vmem_limit_bytes=int(max(budget, 4 * tile_bytes)),
        ),
    )(slab)

    out_flat = out.reshape(-1)
    if pad_elems:
        out_flat = out_flat[:n]
    return out_flat.reshape(x.shape)


def base_model_forward_pallas(x: jax.Array, input_dim: int) -> jax.Array:
    """Pallas template: validated tiled pass-through (subclass compute hook).

    WARNING: x is donated (its device buffer is aliased into the output); do
    not reuse x after this call.  For the pure identity, prefer
    base_model_forward, which moves zero bytes.
    """
    _validate(x, input_dim)
    return _passthrough_pipeline(x)


# ---------------------------------------------------------------------------
# Self-test.
# ---------------------------------------------------------------------------

if __name__ == "__main__":
    key = jax.random.PRNGKey(0)
    batch, input_dim = 8, 128
    x = jax.random.normal(key, (batch, input_dim), dtype=jnp.float32)
    x_host = jax.device_get(x)

    # Zero-copy production path (identity after static validation).
    y_fast = base_model_forward(x, input_dim)
    jax.block_until_ready(y_fast)
    assert y_fast.shape == (batch, input_dim) and y_fast.dtype == x.dtype

    # Tiled Pallas template path (donates its input; pass a dedicated copy).
    x_pallas = jnp.asarray(x_host)
    y = base_model_forward_pallas(x_pallas, input_dim)
    jax.block_until_ready(y)
    assert y.shape == (batch, input_dim) and y.dtype == jnp.float32
    assert bool(jnp.allclose(y, jnp.asarray(x_host))), "pass-through mismatch"

    # Ragged / non-(8,128)-aligned shape exercises the padded lane-dense path.
    key2 = jax.random.PRNGKey(1)
    x2_host = jax.device_get(jax.random.normal(key2, (5, 36), dtype=jnp.float32))
    y2 = base_model_forward_pallas(jnp.asarray(x2_host), 36)
    jax.block_until_ready(y2)
    assert y2.shape == (5, 36) and y2.dtype == jnp.float32
    assert bool(jnp.allclose(y2, jnp.asarray(x2_host))), "ragged pass-through mismatch"

    print("KERNEL_OK")
</pallas_src>

<mosaic_0001>
module attributes {stable_mosaic.version = 11 : i64} {
  func.func @_passthrough_kernel(%arg0: i32, %arg1: memref<8x128xf32, #tpu.memory_space<vmem>>, %arg2: memref<8x128xf32, #tpu.memory_space<vmem>>) attributes {dimension_semantics = [#tpu.dimension_semantics<parallel>], iteration_bounds = array<i64: 1>, scalar_prefetch = 0 : i64, scratch_operands = 0 : i64, tpu.core_type = #tpu.core_type<tc>, window_params = [{transform_indices = @transform_0, window_bounds = array<i64: 8, 128>}, {transform_indices = @transform_1, window_bounds = array<i64: 8, 128>}]} {
    %c0 = arith.constant 0 : index
    %c0_0 = arith.constant 0 : index
    %0 = vector.load %arg1[%c0, %c0_0] : memref<8x128xf32, #tpu.memory_space<vmem>>, vector<8x128xf32>
    %c0_1 = arith.constant 0 : index
    %c0_2 = arith.constant 0 : index
    %1 = vector.load %arg2[%c0_1, %c0_2] : memref<8x128xf32, #tpu.memory_space<vmem>>, vector<8x128xf32>
    tpu.vector_store %arg2[%c0_1, %c0_2], %0 {strides = array<i32>} : memref<8x128xf32, #tpu.memory_space<vmem>>, vector<8x128xf32>,
    return
  }
  func.func @transform_0(%arg0: i32) -> (i32, i32) {
    %c0_i32 = arith.constant 0 : i32
    %c0_i32_0 = arith.constant 0 : i32
    return %arg0, %c0_i32 : i32, i32
  }
  func.func @transform_1(%arg0: i32) -> (i32, i32) {
    %c0_i32 = arith.constant 0 : i32
    %c0_i32_0 = arith.constant 0 : i32
    return %arg0, %c0_i32 : i32, i32
  }
}

</mosaic_0001>

<bundles_post_ra>
// kernel: _passthrough_pipeline.1
= control target key start
LH: loop header
LB: loop body
LE: loop exit
PB: predicated region body
PF: predicated region fallthrough
CT: control target
= control target key end

     0   :  { %6 = vsyncpa [#allocation3], 0  ;;  %s124_s0 = inlined_call_operand.hbm [shape: f32[8,128], index: 0, kind: input, shape index: {}, may-alias: {0,1}]   ;;  %s125_s1 = inlined_call_operand.hbm [shape: f32[8,128], index: 1, kind: output, shape index: {}, may-alias: {0,1}]  }
   0x1   :  { %7 = vsyncpa [#allocation4], 0  ;;  %s88_s6 = smov [#allocation2]   ;;  %s40_s10 = scalar_lea.hbm %s124_s0, 128 }
   0x2   :  { %s14_s7 = sshll.u32 %s88_s6, 4  ;;  %p41_p0 = scmp.ne.s32.totalorder %s124_s0, %s40_s10  ;;  %s15_s7 = int_to_ptr.vmem [resolvable:$true] %s14_s7 }
   0x3   :  { %p44_p1 = scmp.lt.u32.totalorder %s40_s10, %s124_s0 }
   0x5   :  { %p46_p2 = pnand %p44_p1, %p41_p0 }
   0x7   :  { %49 = shalt.err (!%p46_p2)
}
   0x8   :  { %s50_s15 = scalar_lea.vmem %s15_s7, 128  ;;  %p55_p4 = scmp.lt.s32.totalorder %s15_s7, %s15_s7 }
   0x9   :  { %p51_p3 = scmp.ne.s32.totalorder %s15_s7, %s50_s15  ;;  %p56_p5 = scmp.lt.s32.totalorder %s50_s15, %s50_s15 }
   0xb   :  { %p57_p6 = por %p56_p5, %p55_p4 }
   0xd   :  { %p58_p7 = pnand %p57_p6, %p51_p3 }
   0xf   :  { %61 = shalt.err (!%p58_p7)
}
  0x10   :  { %17 = dma.hbm_to_vmem [thread:$0]  %s124_s0, 128, %s15_s7, [#allocation3]  }
  0x11   :  { %84 = dma.done.wait [#allocation3], 128  }
  0x12   :  { %85 = vsyncadd [#allocation3], 4294967168  ;;  %s89_s18 = smov [#allocation5]   ;;  %v21_v0 = vld [vmem:[#allocation2] sm:$0xff] }
  0x13   :  { %s29_s19 = sshll.u32 %s89_s18, 4  ;;  %22 = vst [vmem:[#allocation5] sm:$0xff] %v21_v0  ;;  %s30_s19 = int_to_ptr.vmem [resolvable:$true] %s29_s19 }
  0x14   :  { %s62_s20 = scalar_lea.vmem %s30_s19, 128  ;;  %p67_p9 = scmp.lt.s32.totalorder %s30_s19, %s30_s19 }
  0x15   :  { %p63_p8 = scmp.ne.s32.totalorder %s30_s19, %s62_s20  ;;  %p68_p10 = scmp.lt.s32.totalorder %s62_s20, %s62_s20 }
  0x17   :  { %p69_p11 = por %p68_p10, %p67_p9 }
  0x19   :  { %p70_p12 = pnand %p69_p11, %p63_p8 }
  0x1b   :  { %73 = shalt.err (!%p70_p12)
}
  0x1c   :  { %s74_s23 = scalar_lea.hbm %s125_s1, 128 }
  0x1d   :  { %p75_p13 = scmp.ne.s32.totalorder %s125_s1, %s74_s23  ;;  %p78_p0 = scmp.lt.u32.totalorder %s74_s23, %s125_s1 }
  0x1f   :  { %p80_p1 = pnand %p78_p0, %p75_p13 }
  0x21   :  { %83 = shalt.err (!%p80_p1)
}
  0x22   :  { %32 = dma.vmem_to_hbm [thread:$0]  %s30_s19, 128, %s125_s1, [#allocation4]  }
  0x23   :  { %86 = dma.done.wait [#allocation4], 128  }
  0x24   :  { %87 = vsyncadd [#allocation4], 4294967168 }
  0x25   :  { %36 = vsyncpa [#allocation3], 1 }
  0x26   :  { %37 = vsyncpa [#allocation4], 1 }

</bundles_post_ra>
